<compile_context>
chip_gen: v5e
topology: v5e:2x2
jax: 0.10.0
libtpu: 0.0.40
codegen_flags: <defaults>
</compile_context>

<pallas_src>
import math
import functools

import jax
import jax.numpy as jnp
from jax import lax
from jax.experimental import pallas as pl
from jax.experimental.pallas import tpu as pltpu


def _sylvester_flow_kernel(z_ref, v_ref, w_ref, b_ref, out_ref,
                           *, n_blocks, inv_c, sub, n_sub):
    # ---- Hoisted, z-independent parameter math (one batched tanh) ----------
    v_hat = jnp.tanh(v_ref[...].astype(jnp.float32)) * inv_c      # (H, n_blocks)
    w_hat = jnp.tanh(w_ref[...].astype(jnp.float32)) * inv_c      # (H, n_blocks)
    b = b_ref[...].astype(jnp.float32)                            # (H, n_blocks)
    # Per-block scalar S_i = sum_h v_hat*w_hat for the re-associated det.
    s_vw = jnp.sum(v_hat * w_hat, axis=0, keepdims=True)          # (1, n_blocks)

    def sub_body(c, carry):
        off = pl.multiple_of(c * sub, sub)        # aligned lane offset
        z = z_ref[0:1, pl.ds(off, sub)].astype(jnp.float32)        # (1, sub)

        det_rows = []
        # Serial flow-block chain, fully unrolled (n_blocks small & static);
        # only tanh(pre) and the two sublane reduces sit on the critical path.
        for i in range(n_blocks):
            w_i = w_hat[:, i:i + 1]                                # (H, 1)
            v_i = v_hat[:, i:i + 1]                                # (H, 1)
            b_i = b[:, i:i + 1]                                    # (H, 1)

            pre = w_i * z + b_i                                    # (H, sub) VPU
            h = jnp.tanh(pre)                                      # (H, sub) EUP

            vh = v_i * h                                           # reused twice
            wh = w_i * h

            # f_z = z + tanh(z @ w_hat + b) @ v_hat   (rank-1 -> sublane reduce)
            z = z + jnp.sum(vh, axis=0, keepdims=True)             # (1, sub)

            # det = 1 + sum_h w*(1-h^2)*v  ==  (1 + S_i) - sum_h (w*h)*(v*h)
            det_rows.append((1.0 + s_vw[0:1, i:i + 1])
                            - jnp.sum(wh * vh, axis=0, keepdims=True))

        # Batched log in the epilogue: one EUP log pass over all blocks,
        # then one sublane-sum, instead of n_blocks logs on (1, sub) rows.
        det_stack = jnp.concatenate(det_rows, axis=0)              # (n_blocks, sub)
        ld = jnp.sum(jnp.log(jnp.abs(det_stack) + 1e-6),
                     axis=0, keepdims=True)                        # (1, sub)

        # Two direct lane-dense row stores (no concat/relayout on store path).
        out_ref[0:1, pl.ds(off, sub)] = z.astype(out_ref.dtype)
        out_ref[1:2, pl.ds(off, sub)] = ld.astype(out_ref.dtype)
        return carry

    # Inner sub-chunk loop, fully unrolled so the LLO scheduler sees it all.
    lax.fori_loop(0, n_sub, sub_body, 0, unroll=True)


def _round_up(x, m):
    return ((x + m - 1) // m) * m


def _pick_batch_tile(b_pad):
    """b_pad is a multiple of 128; pick the largest candidate tile dividing it."""
    for bt in (2048, 1024, 512, 256, 128):
        if b_pad % bt == 0:
            return bt
    return 128  # unreachable: 128 always divides b_pad


def sylvester_flow(z, v_all, w_all, b_all):
    """z: (B, 1) f32; v_all/w_all/b_all: (n_blocks, H) f32.

    Returns (f_z: (B, 1), sum_log_abs_det_jacobians: (B,)) matching the PyTorch
    SylvesterFLow.forward (args.model == 'sylvester', learn_base=False).
    """
    B = z.shape[0]
    n_blocks, H = v_all.shape
    inv_c = 1.0 / (math.sqrt(H) + 1e-6)

    # Pad batch to a multiple of 128 for lane-dense tiles / unmasked stores.
    b_pad = _round_up(max(B, 1), 128)
    bt = _pick_batch_tile(b_pad)
    sub = min(512, bt)            # inner sub-chunk width (multiple of 128)
    n_sub = bt // sub             # exact: bt in {128,256,512,1024,2048}

    z_row = jnp.pad(z.astype(jnp.float32).reshape(1, B),
                    ((0, 0), (0, b_pad - B)))
    # Parameters transposed so each block's column is a static lane slice.
    v_t = v_all.astype(jnp.float32).T          # (H, n_blocks)
    w_t = w_all.astype(jnp.float32).T          # (H, n_blocks)
    b_t = b_all.astype(jnp.float32).T          # (H, n_blocks)

    kernel = functools.partial(_sylvester_flow_kernel,
                               n_blocks=n_blocks, inv_c=inv_c,
                               sub=sub, n_sub=n_sub)

    out = pl.pallas_call(
        kernel,
        out_shape=jax.ShapeDtypeStruct((2, b_pad), jnp.float32),
        grid=(b_pad // bt,),
        in_specs=[
            pl.BlockSpec((1, bt), lambda j: (0, j)),            # z batch tile
            pl.BlockSpec((H, n_blocks), lambda j: (0, 0)),      # v (all blocks)
            pl.BlockSpec((H, n_blocks), lambda j: (0, 0)),      # w (all blocks)
            pl.BlockSpec((H, n_blocks), lambda j: (0, 0)),      # b (all blocks)
        ],
        out_specs=pl.BlockSpec((2, bt), lambda j: (0, j)),
        # Batch tiles are fully independent; "parallel" lets megacore / v7x
        # shard the grid across TensorCores.
        # TODO(synk): on v7x, benchmark against pltpu.CORE_PARALLEL to confirm
        # the grid actually splits across both TensorCores for large B.
        compiler_params=pltpu.CompilerParams(
            dimension_semantics=("parallel",),
        ),
    )(z_row, v_t, w_t, b_t)

    # Row 0 = f_z, row 1 = sum log|det J|; drop lane padding.
    return out[0, :B].reshape(B, 1), out[1, :B]


def sylvester_flow_ref(z, v_all, w_all, b_all):
    """Pure-JAX reference mirroring the PyTorch module."""
    n_blocks, H = v_all.shape
    c = math.sqrt(H) + 1e-6
    sum_ld = jnp.zeros((z.shape[0],), jnp.float32)
    for i in range(n_blocks):
        v_hat = jnp.tanh(v_all[i].reshape(H, 1)) / c        # (H, 1)
        w_hat = jnp.tanh(w_all[i].reshape(1, H)) / c        # (1, H)
        b = b_all[i]                                        # (H,)
        h = jnp.tanh(z @ w_hat + b)                         # (B, H)
        f_z = z + h @ v_hat                                 # (B, 1)
        sii = 1.0 - h ** 2
        det = 1.0 + (w_hat[0] * sii * v_hat[:, 0]).sum(1)   # (B,)
        sum_ld = sum_ld + jnp.log(jnp.abs(det) + 1e-6)
        z = f_z
    return z, sum_ld


if __name__ == "__main__":
    # Config consistent with SylvesterFLow(n_blocks, input_size=1, hidden_size=H),
    # args.model == 'sylvester', args.learn_base == False.
    n_blocks = 4
    input_size = 1
    hidden_size = 32
    batch = 8
    init_sigma = 0.01

    key = jax.random.PRNGKey(0)
    kx, kv, kw = jax.random.split(key, 3)

    # Deterministic parameter init (shapes from SylvesterTransform.__init__):
    # v: (hidden, 1) ~ N(0, init_sigma), w: (1, hidden) ~ N(0, init_sigma), b: zeros(hidden)
    v_all = init_sigma * jax.random.normal(kv, (n_blocks, hidden_size), jnp.float32)
    w_all = init_sigma * jax.random.normal(kw, (n_blocks, hidden_size), jnp.float32)
    b_all = jnp.zeros((n_blocks, hidden_size), jnp.float32)

    x = jax.random.normal(kx, (batch, input_size), jnp.float32)

    f_z, sum_ld = jax.jit(sylvester_flow)(x, v_all, w_all, b_all)
    jax.block_until_ready((f_z, sum_ld))

    f_z_ref, sum_ld_ref = sylvester_flow_ref(x, v_all, w_all, b_all)
    assert f_z.shape == (batch, 1) and sum_ld.shape == (batch,)
    assert jnp.allclose(f_z, f_z_ref, atol=1e-5, rtol=1e-5)
    assert jnp.allclose(sum_ld, sum_ld_ref, atol=1e-5, rtol=1e-5)

    print("KERNEL_OK")
</pallas_src>

<mosaic_0001>
module attributes {stable_mosaic.version = 11 : i64} {
  func.func @_sylvester_flow_kernel(%arg0: i32, %arg1: memref<1x128xf32, #tpu.memory_space<vmem>>, %arg2: memref<32x4xf32, #tpu.memory_space<vmem>>, %arg3: memref<32x4xf32, #tpu.memory_space<vmem>>, %arg4: memref<32x4xf32, #tpu.memory_space<vmem>>, %arg5: memref<2x128xf32, #tpu.memory_space<vmem>>) attributes {dimension_semantics = [#tpu.dimension_semantics<parallel>], iteration_bounds = array<i64: 1>, scalar_prefetch = 0 : i64, scratch_operands = 0 : i64, tpu.core_type = #tpu.core_type<tc>, window_params = [{transform_indices = @transform_0, window_bounds = array<i64: 1, 128>}, {pipeline_mode = #tpu.pipeline_mode<synchronous>, transform_indices = @transform_1, window_bounds = array<i64: 32, 4>}, {pipeline_mode = #tpu.pipeline_mode<synchronous>, transform_indices = @transform_2, window_bounds = array<i64: 32, 4>}, {pipeline_mode = #tpu.pipeline_mode<synchronous>, transform_indices = @transform_3, window_bounds = array<i64: 32, 4>}, {transform_indices = @transform_4, window_bounds = array<i64: 2, 128>}]} {
    %c0 = arith.constant 0 : index
    %c0_0 = arith.constant 0 : index
    %0 = vector.load %arg2[%c0, %c0_0] : memref<32x4xf32, #tpu.memory_space<vmem>>, vector<32x4xf32>
    %1 = math.tanh %0 : vector<32x4xf32>
    %cst = arith.constant 0.176776662 : f32
    %2 = vector.broadcast %cst : f32 to vector<32x4xf32>
    %3 = arith.mulf %1, %2 : vector<32x4xf32>
    %c0_1 = arith.constant 0 : index
    %c0_2 = arith.constant 0 : index
    %4 = vector.load %arg3[%c0_1, %c0_2] : memref<32x4xf32, #tpu.memory_space<vmem>>, vector<32x4xf32>
    %5 = math.tanh %4 : vector<32x4xf32>
    %cst_3 = arith.constant 0.176776662 : f32
    %6 = vector.broadcast %cst_3 : f32 to vector<32x4xf32>
    %7 = arith.mulf %5, %6 : vector<32x4xf32>
    %c0_4 = arith.constant 0 : index
    %c0_5 = arith.constant 0 : index
    %8 = vector.load %arg4[%c0_4, %c0_5] : memref<32x4xf32, #tpu.memory_space<vmem>>, vector<32x4xf32>
    %9 = arith.mulf %3, %7 : vector<32x4xf32>
    %cst_6 = arith.constant dense<0.000000e+00> : vector<4xf32>
    %10 = vector.multi_reduction <add>, %9, %cst_6 [0] : vector<32x4xf32> to vector<4xf32>
    %11 = vector.shape_cast %10 : vector<4xf32> to vector<1x4xf32>
    %c0_i32 = arith.constant 0 : i32
    %c128_i32 = arith.constant 128 : i32
    %12 = arith.muli %c0_i32, %c128_i32 : i32
    %13 = tpu.assume_multiple %12, 128 : i32
    %c0_7 = arith.constant 0 : index
    %14 = arith.index_cast %13 : i32 to index
    %15 = vector.load %arg1[%c0_7, %14] : memref<1x128xf32, #tpu.memory_space<vmem>>, vector<1x128xf32>
    %16 = vector.extract_strided_slice %7 {offsets = [0, 0], sizes = [32, 1], strides = [1, 1]} : vector<32x4xf32> to vector<32x1xf32>
    %17 = vector.extract_strided_slice %3 {offsets = [0, 0], sizes = [32, 1], strides = [1, 1]} : vector<32x4xf32> to vector<32x1xf32>
    %18 = vector.extract_strided_slice %8 {offsets = [0, 0], sizes = [32, 1], strides = [1, 1]} : vector<32x4xf32> to vector<32x1xf32>
    %19 = vector.broadcast %16 : vector<32x1xf32> to vector<32x128xf32>
    %20 = vector.broadcast %15 : vector<1x128xf32> to vector<32x128xf32>
    %21 = arith.mulf %19, %20 : vector<32x128xf32>
    %22 = vector.broadcast %18 : vector<32x1xf32> to vector<32x128xf32>
    %23 = arith.addf %21, %22 : vector<32x128xf32>
    %24 = math.tanh %23 : vector<32x128xf32>
    %25 = vector.broadcast %17 : vector<32x1xf32> to vector<32x128xf32>
    %26 = arith.mulf %25, %24 : vector<32x128xf32>
    %27 = vector.broadcast %16 : vector<32x1xf32> to vector<32x128xf32>
    %28 = arith.mulf %27, %24 : vector<32x128xf32>
    %cst_8 = arith.constant dense<0.000000e+00> : vector<128xf32>
    %29 = vector.multi_reduction <add>, %26, %cst_8 [0] : vector<32x128xf32> to vector<128xf32>
    %30 = vector.shape_cast %29 : vector<128xf32> to vector<1x128xf32>
    %31 = arith.addf %15, %30 : vector<1x128xf32>
    %32 = vector.extract_strided_slice %11 {offsets = [0, 0], sizes = [1, 1], strides = [1, 1]} : vector<1x4xf32> to vector<1x1xf32>
    %cst_9 = arith.constant 1.000000e+00 : f32
    %33 = vector.broadcast %cst_9 : f32 to vector<1x1xf32>
    %34 = arith.addf %33, %32 : vector<1x1xf32>
    %35 = arith.mulf %28, %26 : vector<32x128xf32>
    %cst_10 = arith.constant dense<0.000000e+00> : vector<128xf32>
    %36 = vector.multi_reduction <add>, %35, %cst_10 [0] : vector<32x128xf32> to vector<128xf32>
    %37 = vector.shape_cast %36 : vector<128xf32> to vector<1x128xf32>
    %38 = vector.broadcast %34 : vector<1x1xf32> to vector<1x128xf32>
    %39 = arith.subf %38, %37 : vector<1x128xf32>
    %40 = vector.extract_strided_slice %7 {offsets = [0, 1], sizes = [32, 1], strides = [1, 1]} : vector<32x4xf32> to vector<32x1xf32>
    %41 = vector.extract_strided_slice %3 {offsets = [0, 1], sizes = [32, 1], strides = [1, 1]} : vector<32x4xf32> to vector<32x1xf32>
    %42 = vector.extract_strided_slice %8 {offsets = [0, 1], sizes = [32, 1], strides = [1, 1]} : vector<32x4xf32> to vector<32x1xf32>
    %43 = vector.broadcast %40 : vector<32x1xf32> to vector<32x128xf32>
    %44 = vector.broadcast %31 : vector<1x128xf32> to vector<32x128xf32>
    %45 = arith.mulf %43, %44 : vector<32x128xf32>
    %46 = vector.broadcast %42 : vector<32x1xf32> to vector<32x128xf32>
    %47 = arith.addf %45, %46 : vector<32x128xf32>
    %48 = math.tanh %47 : vector<32x128xf32>
    %49 = vector.broadcast %41 : vector<32x1xf32> to vector<32x128xf32>
    %50 = arith.mulf %49, %48 : vector<32x128xf32>
    %51 = vector.broadcast %40 : vector<32x1xf32> to vector<32x128xf32>
    %52 = arith.mulf %51, %48 : vector<32x128xf32>
    %cst_11 = arith.constant dense<0.000000e+00> : vector<128xf32>
    %53 = vector.multi_reduction <add>, %50, %cst_11 [0] : vector<32x128xf32> to vector<128xf32>
    %54 = vector.shape_cast %53 : vector<128xf32> to vector<1x128xf32>
    %55 = arith.addf %31, %54 : vector<1x128xf32>
    %56 = vector.extract_strided_slice %11 {offsets = [0, 1], sizes = [1, 1], strides = [1, 1]} : vector<1x4xf32> to vector<1x1xf32>
    %cst_12 = arith.constant 1.000000e+00 : f32
    %57 = vector.broadcast %cst_12 : f32 to vector<1x1xf32>
    %58 = arith.addf %57, %56 : vector<1x1xf32>
    %59 = arith.mulf %52, %50 : vector<32x128xf32>
    %cst_13 = arith.constant dense<0.000000e+00> : vector<128xf32>
    %60 = vector.multi_reduction <add>, %59, %cst_13 [0] : vector<32x128xf32> to vector<128xf32>
    %61 = vector.shape_cast %60 : vector<128xf32> to vector<1x128xf32>
    %62 = vector.broadcast %58 : vector<1x1xf32> to vector<1x128xf32>
    %63 = arith.subf %62, %61 : vector<1x128xf32>
    %64 = vector.extract_strided_slice %7 {offsets = [0, 2], sizes = [32, 1], strides = [1, 1]} : vector<32x4xf32> to vector<32x1xf32>
    %65 = vector.extract_strided_slice %3 {offsets = [0, 2], sizes = [32, 1], strides = [1, 1]} : vector<32x4xf32> to vector<32x1xf32>
    %66 = vector.extract_strided_slice %8 {offsets = [0, 2], sizes = [32, 1], strides = [1, 1]} : vector<32x4xf32> to vector<32x1xf32>
    %67 = vector.broadcast %64 : vector<32x1xf32> to vector<32x128xf32>
    %68 = vector.broadcast %55 : vector<1x128xf32> to vector<32x128xf32>
    %69 = arith.mulf %67, %68 : vector<32x128xf32>
    %70 = vector.broadcast %66 : vector<32x1xf32> to vector<32x128xf32>
    %71 = arith.addf %69, %70 : vector<32x128xf32>
    %72 = math.tanh %71 : vector<32x128xf32>
    %73 = vector.broadcast %65 : vector<32x1xf32> to vector<32x128xf32>
    %74 = arith.mulf %73, %72 : vector<32x128xf32>
    %75 = vector.broadcast %64 : vector<32x1xf32> to vector<32x128xf32>
    %76 = arith.mulf %75, %72 : vector<32x128xf32>
    %cst_14 = arith.constant dense<0.000000e+00> : vector<128xf32>
    %77 = vector.multi_reduction <add>, %74, %cst_14 [0] : vector<32x128xf32> to vector<128xf32>
    %78 = vector.shape_cast %77 : vector<128xf32> to vector<1x128xf32>
    %79 = arith.addf %55, %78 : vector<1x128xf32>
    %80 = vector.extract_strided_slice %11 {offsets = [0, 2], sizes = [1, 1], strides = [1, 1]} : vector<1x4xf32> to vector<1x1xf32>
    %cst_15 = arith.constant 1.000000e+00 : f32
    %81 = vector.broadcast %cst_15 : f32 to vector<1x1xf32>
    %82 = arith.addf %81, %80 : vector<1x1xf32>
    %83 = arith.mulf %76, %74 : vector<32x128xf32>
    %cst_16 = arith.constant dense<0.000000e+00> : vector<128xf32>
    %84 = vector.multi_reduction <add>, %83, %cst_16 [0] : vector<32x128xf32> to vector<128xf32>
    %85 = vector.shape_cast %84 : vector<128xf32> to vector<1x128xf32>
    %86 = vector.broadcast %82 : vector<1x1xf32> to vector<1x128xf32>
    %87 = arith.subf %86, %85 : vector<1x128xf32>
    %88 = vector.extract_strided_slice %7 {offsets = [0, 3], sizes = [32, 1], strides = [1, 1]} : vector<32x4xf32> to vector<32x1xf32>
    %89 = vector.extract_strided_slice %3 {offsets = [0, 3], sizes = [32, 1], strides = [1, 1]} : vector<32x4xf32> to vector<32x1xf32>
    %90 = vector.extract_strided_slice %8 {offsets = [0, 3], sizes = [32, 1], strides = [1, 1]} : vector<32x4xf32> to vector<32x1xf32>
    %91 = vector.broadcast %88 : vector<32x1xf32> to vector<32x128xf32>
    %92 = vector.broadcast %79 : vector<1x128xf32> to vector<32x128xf32>
    %93 = arith.mulf %91, %92 : vector<32x128xf32>
    %94 = vector.broadcast %90 : vector<32x1xf32> to vector<32x128xf32>
    %95 = arith.addf %93, %94 : vector<32x128xf32>
    %96 = math.tanh %95 : vector<32x128xf32>
    %97 = vector.broadcast %89 : vector<32x1xf32> to vector<32x128xf32>
    %98 = arith.mulf %97, %96 : vector<32x128xf32>
    %99 = vector.broadcast %88 : vector<32x1xf32> to vector<32x128xf32>
    %100 = arith.mulf %99, %96 : vector<32x128xf32>
    %cst_17 = arith.constant dense<0.000000e+00> : vector<128xf32>
    %101 = vector.multi_reduction <add>, %98, %cst_17 [0] : vector<32x128xf32> to vector<128xf32>
    %102 = vector.shape_cast %101 : vector<128xf32> to vector<1x128xf32>
    %103 = arith.addf %79, %102 : vector<1x128xf32>
    %104 = vector.extract_strided_slice %11 {offsets = [0, 3], sizes = [1, 1], strides = [1, 1]} : vector<1x4xf32> to vector<1x1xf32>
    %cst_18 = arith.constant 1.000000e+00 : f32
    %105 = vector.broadcast %cst_18 : f32 to vector<1x1xf32>
    %106 = arith.addf %105, %104 : vector<1x1xf32>
    %107 = arith.mulf %100, %98 : vector<32x128xf32>
    %cst_19 = arith.constant dense<0.000000e+00> : vector<128xf32>
    %108 = vector.multi_reduction <add>, %107, %cst_19 [0] : vector<32x128xf32> to vector<128xf32>
    %109 = vector.shape_cast %108 : vector<128xf32> to vector<1x128xf32>
    %110 = vector.broadcast %106 : vector<1x1xf32> to vector<1x128xf32>
    %111 = arith.subf %110, %109 : vector<1x128xf32>
    %112 = tpu.concatenate %39, %63, %87, %111 in 0 : vector<1x128xf32>, vector<1x128xf32>, vector<1x128xf32>, vector<1x128xf32> -> vector<4x128xf32>
    %113 = math.absf %112 : vector<4x128xf32>
    %cst_20 = arith.constant 9.99999997E-7 : f32
    %114 = vector.broadcast %cst_20 : f32 to vector<4x128xf32>
    %115 = arith.addf %113, %114 : vector<4x128xf32>
    %116 = math.log %115 : vector<4x128xf32>
    %cst_21 = arith.constant dense<0.000000e+00> : vector<128xf32>
    %117 = vector.multi_reduction <add>, %116, %cst_21 [0] : vector<4x128xf32> to vector<128xf32>
    %118 = vector.shape_cast %117 : vector<128xf32> to vector<1x128xf32>
    %c0_22 = arith.constant 0 : index
    %119 = arith.index_cast %13 : i32 to index
    %120 = vector.load %arg5[%c0_22, %119] : memref<2x128xf32, #tpu.memory_space<vmem>>, vector<1x128xf32>
    tpu.vector_store %arg5[%c0_22, %119], %103 {strides = array<i32>} : memref<2x128xf32, #tpu.memory_space<vmem>>, vector<1x128xf32>,
    %c1 = arith.constant 1 : index
    %121 = arith.index_cast %13 : i32 to index
    %122 = vector.load %arg5[%c1, %121] : memref<2x128xf32, #tpu.memory_space<vmem>>, vector<1x128xf32>
    tpu.vector_store %arg5[%c1, %121], %118 {strides = array<i32>} : memref<2x128xf32, #tpu.memory_space<vmem>>, vector<1x128xf32>,
    %c1_i32 = arith.constant 1 : i32
    return
  }
  func.func @transform_0(%arg0: i32) -> (i32, i32) {
    %c0_i32 = arith.constant 0 : i32
    %c0_i32_0 = arith.constant 0 : i32
    return %c0_i32, %arg0 : i32, i32
  }
  func.func @transform_1(%arg0: i32) -> (i32, i32) {
    %c0_i32 = arith.constant 0 : i32
    %c0_i32_0 = arith.constant 0 : i32
    %c0_i32_1 = arith.constant 0 : i32
    return %c0_i32, %c0_i32_0 : i32, i32
  }
  func.func @transform_2(%arg0: i32) -> (i32, i32) {
    %c0_i32 = arith.constant 0 : i32
    %c0_i32_0 = arith.constant 0 : i32
    %c0_i32_1 = arith.constant 0 : i32
    return %c0_i32, %c0_i32_0 : i32, i32
  }
  func.func @transform_3(%arg0: i32) -> (i32, i32) {
    %c0_i32 = arith.constant 0 : i32
    %c0_i32_0 = arith.constant 0 : i32
    %c0_i32_1 = arith.constant 0 : i32
    return %c0_i32, %c0_i32_0 : i32, i32
  }
  func.func @transform_4(%arg0: i32) -> (i32, i32) {
    %c0_i32 = arith.constant 0 : i32
    %c0_i32_0 = arith.constant 0 : i32
    return %c0_i32, %arg0 : i32, i32
  }
}

</mosaic_0001>

<bundles_post_ra>
// kernel: sylvester_flow.1
= control target key start
LH: loop header
LB: loop body
LE: loop exit
PB: predicated region body
PF: predicated region fallthrough
CT: control target
= control target key end

     0   :  { %v566_v0 = vmov 0   ;;  %vm49_vm0 = vcmask 31744   ;;  %v567_v44 = vmov 1   ;;  %v568_v48 = vmov 2   ;;  %s741_s3 = inlined_call_operand.vmem [shape: f32[32,4], index: 3, kind: input, shape index: {}]   ;;  %s742_s2 = inlined_call_operand.vmem [shape: f32[32,4], index: 2, kind: input, shape index: {}]   ;;  %s743_s1 = inlined_call_operand.vmem [shape: f32[32,4], index: 1, kind: input, shape index: {}]   ;;  %s744_s0 = inlined_call_operand.vmem [shape: f32[1,128], index: 0, kind: input, shape index: {}]   ;;  %s745_s4 = inlined_call_operand.vmem [shape: f32[2,128], index: 4, kind: output, shape index: {}]  }
   0x1   :  { %502 = vset.pattern.permute.xlu2 %v566_v0  ;;  %v598_v1 = vld [vmem:[%s741_s3] sm:$0xff]  ;;  %504 = vset.pattern.permute.xlu1 %v566_v0  ;;  %v31_v2 = vld [vmem:[%s742_s2 + $0x10] sm:$0xff]  ;;  %v32_v4 = vld [vmem:[%s742_s2 + $0x18] sm:$0xff]  ;;  %v569_v50 = vmov 3   ;;  %vm474_vm1 = vcmask 1040384   ;;  %vm476_vm2 = vcmask 1041408  }
   0x2   :  { %v29_v3 = vld [vmem:[%s742_s2] sm:$0xff]  ;;  %93 = vperm.xlu2 %502, %v598_v1   ;;  %503 = vset.pattern.permute.xlu0 %v566_v0  ;;  %516 = vtanh.f32 %v31_v2  ;;  %v30_v5 = vld [vmem:[%s742_s2 + $0x8] sm:$0xff]  ;;  %v20_v7 = vld [vmem:[%s743_s1 + $0x18] sm:$0xff]  ;;  %vm478_vm3 = vcmask 1042432   ;;  %vm484_vm4 = vcmask 1043456  }
   0x3   :  { %518 = vtanh.f32 %v29_v3  ;;  %v17_v6 = vld [vmem:[%s743_s1] sm:$0xff]  ;;  %v19_v8 = vld [vmem:[%s743_s1 + $0x10] sm:$0xff]  ;;  %v18_v9 = vld [vmem:[%s743_s1 + $0x8] sm:$0xff] }
   0x4   :  { %520 = vtanh.f32 %v32_v4  ;;  %v628_v10 = vld [vmem:[%s741_s3 + $0x8] sm:$0xff]  ;;  %v44_v37 = vld [vmem:[%s741_s3 + $0x18] sm:$0xff]  ;;  %v43_v38 = vld [vmem:[%s741_s3 + $0x10] sm:$0xff] }
   0x5   :  { %522 = vtanh.f32 %v30_v5  ;;  %v515_v53 = vld [vmem:[%s744_s0] ss:$0 sm:$0xff] }
   0x6   :  { %524 = vtanh.f32 %v17_v6 }
   0x7   :  { %526 = vtanh.f32 %v20_v7 }
   0x8   :  { %v517_v11 = vpop.eup %516  ;;  %528 = vtanh.f32 %v19_v8 }
   0x9   :  { %v519_v12 = vpop.eup %518  ;;  %v630_v13 = vmul.f32 0.17677666, %v517_v11  ;;  %530 = vtanh.f32 %v18_v9 }
   0xa   :  { %v521_v14 = vpop.eup %520  ;;  %v632_v15 = vmul.f32 0.17677666, %v519_v12  ;;  %98 = vperm.xlu2 %502, %v628_v10  }
   0xb   :  { %v523_v16 = vpop.eup %522  ;;  %76 = vperm.xlu1 %504, %v630_v13   ;;  %v643_v24 = vmul.f32 0.17677666, %v521_v14 }
   0xc   :  { %v525_v17 = vpop.eup %524  ;;  %66 = vperm.xlu0 %503, %v632_v15   ;;  %v639_v21 = vmul.f32 0.17677666, %v523_v16 }
   0xd   :  { %v527_v18 = vpop.eup %526  ;;  %v637_v19 = vmul.f32 0.17677666, %v525_v17 }
   0xe   :  { %v529_v20 = vpop.eup %528  ;;  %v641_v22 = vmul.f32 0.17677666, %v527_v18 }
   0xf   :  { %v531_v23 = vpop.eup %530  ;;  %v645_v25 = vmul.f32 0.17677666, %v529_v20  ;;  %v45_v26 = vmul.f32 %v632_v15, %v637_v19 }
  0x10   :  { %v649_v27 = vmul.f32 0.17677666, %v531_v23  ;;  %v48_v30 = vmul.f32 %v643_v24, %v641_v22 }
  0x11   :  { %v47_v28 = vmul.f32 %v630_v13, %v645_v25  ;;  %v50_v31 = vsel %vm49_vm0, %v45_v26, 0.0 }
  0x12   :  { %121 = vperm.xlu2 %502, %v637_v19   ;;  %v46_v29 = vmul.f32 %v639_v21, %v649_v27  ;;  %v55_v35 = vsel %vm49_vm0, %v48_v30, 0.0 }
  0x13   :  { %81 = vperm.xlu1 %504, %v643_v24   ;;  %v53_v33 = vsel %vm49_vm0, %v47_v28, 0.0 }
  0x14   :  { %71 = vperm.xlu0 %503, %v639_v21   ;;  %v51_v32 = vsel %vm49_vm0, %v46_v29, 0.0 }
  0x15   :  { %v52_v34 = vadd.f32 %v51_v32, %v50_v31 }
  0x17   :  { %v54_v36 = vadd.f32 %v53_v33, %v52_v34 }
  0x19   :  { %v56_v39 = vadd.f32 %v55_v35, %v54_v36 }
  0x1a   :  { %136 = vperm.xlu2 %502, %v641_v22  }
  0x1b   :  { %108 = vperm.xlu1 %504, %v44_v37   ;;  %v57_v40 = vrot.slane %v56_v39, 4 }
  0x1c   :  { %103 = vperm.xlu0 %503, %v43_v38  }
  0x1d   :  { %v58_v41 = vadd.f32 %v57_v40, %v56_v39 }
  0x1f   :  { %v59_v42 = vrot.slane %v58_v41, 2 }
  0x21   :  { %v60_v43 = vadd.f32 %v59_v42, %v58_v41 }
  0x22   :  { %506 = vset.pattern.permute.xlu2 %v567_v44 }
  0x23   :  { %131 = vperm.xlu1 %504, %v645_v25   ;;  %182 = vperm.xlu2 %506, %v639_v21   ;;  %v61_v45 = vrot.slane %v60_v43, 1 }
  0x24   :  { %126 = vperm.xlu0 %503, %v649_v27  }
  0x25   :  { %v62_v46 = vadd.f32 %v61_v45, %v60_v43  ;;  %v63_v45 = vld [vmem:[%s744_s0] sm:$0x1] }
  0x27   :  { %v670_v47 = vadd.f32 1.0, %v62_v46 }
  0x2b   :  { %505 = vset.pattern.permute.xlu1 %v567_v44  ;;  %201 = vperm.xlu2 %506, %v598_v1  }
  0x2c   :  { %173 = vperm.xlu0 %503, %v670_v47   ;;  %178 = vperm.xlu1 %505, %v632_v15  }
  0x33   :  { %209 = vperm.xlu2 %506, %v43_v38  }
  0x34   :  { %507 = vset.pattern.permute.xlu0 %v567_v44  ;;  %190 = vperm.xlu1 %505, %v643_v24  }
  0x35   :  { %186 = vperm.xlu0 %507, %v630_v13  }
  0x3b   :  { %229 = vperm.xlu2 %506, %v649_v27  }
  0x3c   :  { %205 = vperm.xlu1 %505, %v628_v10  }
  0x3d   :  { %213 = vperm.xlu0 %507, %v44_v37  }
  0x43   :  { %272 = vperm.xlu2 %506, %v670_v47  }
  0x44   :  { %225 = vperm.xlu1 %505, %v637_v19  }
  0x45   :  { %233 = vperm.xlu0 %507, %v645_v25  }
  0x4b   :  { %510 = vset.pattern.permute.xlu2 %v568_v48 }
  0x4c   :  { %237 = vperm.xlu1 %505, %v641_v22   ;;  %285 = vperm.xlu2 %510, %v630_v13  }
  0x4d   :  { %508 = vset.pattern.permute.xlu0 %v568_v48 }
  0x4e   :  { %277 = vperm.xlu0 %508, %v632_v15  }
  0x54   :  { %509 = vset.pattern.permute.xlu1 %v568_v48  ;;  %300 = vperm.xlu2 %510, %v598_v1  }
  0x55   :  { %281 = vperm.xlu1 %509, %v639_v21  }
  0x56   :  { %304 = vperm.xlu0 %508, %v628_v10  }
  0x5c   :  { %312 = vperm.xlu2 %510, %v44_v37   ;;  %v94_v49 = vpop.permute.xlu2 %93 }
  0x5d   :  { %289 = vperm.xlu1 %509, %v643_v24  }
  0x5e   :  { %324 = vperm.xlu0 %508, %v637_v19  }
  0x64   :  { %332 = vperm.xlu2 %510, %v645_v25   ;;  %v99_v51 = vpop.permute.xlu2 %98 }
  0x65   :  { %308 = vperm.xlu1 %509, %v43_v38  }
  0x66   :  { %336 = vperm.xlu0 %508, %v641_v22  }
  0x6c   :  { %512 = vset.pattern.permute.xlu2 %v569_v50  ;;  %v122_v52 = vpop.permute.xlu2 %121 }
  0x6d   :  { %328 = vperm.xlu1 %509, %v649_v27   ;;  %380 = vperm.xlu2 %512, %v639_v21  }
  0x6e   :  { %513 = vset.pattern.permute.xlu0 %v569_v50 }
  0x6f   :  { %384 = vperm.xlu0 %513, %v630_v13  }
  0x74   :  { %v137_v58 = vpop.permute.xlu2 %136 }
  0x75   :  { %511 = vset.pattern.permute.xlu1 %v569_v50  ;;  %403 = vperm.xlu2 %512, %v628_v10  }
  0x76   :  { %376 = vperm.xlu1 %511, %v632_v15  }
  0x77   :  { %411 = vperm.xlu0 %513, %v44_v37  }
  0x7d   :  { %v77_v54 = vpop.permute.xlu1 %76  ;;  %407 = vperm.xlu2 %512, %v43_v38   ;;  %v705_v5 = vpop.permute.xlu2 %182 }
  0x7e   :  { %v67_v55 = vpop.permute.xlu0 %66  ;;  %399 = vperm.xlu1 %511, %v598_v1   ;;  %v89_v4 = vmul.f32 %v515_v53, %v77_v54 }
  0x7f   :  { %v87_v56 = vmul.f32 %v515_v53, %v67_v55  ;;  %431 = vperm.xlu0 %513, %v645_v25  }
  0x81   :  { %v111_v57 = vadd.f32 %v94_v49, %v87_v56 }
  0x83   :  { %532 = vtanh.f32 %v111_v57 }
  0x85   :  { %v82_v59 = vpop.permute.xlu1 %81  ;;  %427 = vperm.xlu2 %512, %v649_v27   ;;  %v202_v16 = vpop.permute.xlu2 %201 }
  0x86   :  { %v72_v60 = vpop.permute.xlu0 %71  ;;  %388 = vperm.xlu1 %511, %v643_v24   ;;  %v90_v3 = vmul.f32 %v515_v53, %v82_v59 }
  0x87   :  { %v88_v61 = vmul.f32 %v515_v53, %v72_v60  ;;  %470 = vperm.xlu0 %513, %v670_v47  }
  0x89   :  { %v533_v62 = vpop.eup %532  ;;  %v112_v63 = vadd.f32 %v99_v51, %v88_v61 }
  0x8a   :  { %v139_v0 = vmul.f32 %v533_v62, %v122_v52  ;;  %v143_v2 = vmul.f32 %v533_v62, %v67_v55 }
  0x8b   :  { %534 = vtanh.f32 %v112_v63 }
  0x8c   :  { %v158_v1 = vmul.f32 %v143_v2, %v139_v0 }
  0x8d   :  { %v109_v6 = vpop.permute.xlu1 %108  ;;  %514 = vset.pattern.permute.xlu2 %v568_v48  ;;  %v210_v34 = vpop.permute.xlu2 %209 }
  0x8e   :  { %v114_v7 = vadd.f32 %v109_v6, %v90_v3  ;;  %v104_v8 = vpop.permute.xlu0 %103  ;;  %423 = vperm.xlu1 %511, %v637_v19   ;;  %371 = vperm.xlu2 %514, %v670_v47  }
  0x8f   :  { %v113_v9 = vadd.f32 %v104_v8, %v89_v4 }
  0x90   :  { %536 = vtanh.f32 %v114_v7 }
  0x91   :  { %v535_v10 = vpop.eup %534  ;;  %538 = vtanh.f32 %v113_v9 }
  0x92   :  { %v144_v11 = vmul.f32 %v535_v10, %v72_v60 }
  0x95   :  { %v132_v12 = vpop.permute.xlu1 %131  ;;  %v230_v49 = vpop.permute.xlu2 %229 }
  0x96   :  { %v537_v13 = vpop.eup %536  ;;  %v127_v14 = vpop.permute.xlu0 %126  ;;  %435 = vperm.xlu1 %511, %v641_v22  }
  0x97   :  { %v539_v15 = vpop.eup %538  ;;  %v142_v17 = vmul.f32 %v537_v13, %v137_v58  ;;  %v146_v18 = vmul.f32 %v537_v13, %v82_v59  ;;  %v140_v20 = vmul.f32 %v535_v10, %v127_v14 }
  0x98   :  { %v141_v21 = vmul.f32 %v539_v15, %v132_v12  ;;  %v145_v23 = vmul.f32 %v539_v15, %v77_v54 }
  0x99   :  { %v161_v19 = vmul.f32 %v146_v18, %v142_v17  ;;  %v147_v24 = vadd.f32 %v140_v20, %v139_v0  ;;  %v159_v25 = vmul.f32 %v144_v11, %v140_v20 }
  0x9a   :  { %v160_v26 = vmul.f32 %v145_v23, %v141_v21 }
  0x9b   :  { %v148_v27 = vadd.f32 %v147_v24, %v141_v21  ;;  %v162_v28 = vadd.f32 %v159_v25, %v158_v1 }
  0x9d   :  { %v149_v29 = vadd.f32 %v148_v27, %v142_v17  ;;  %v163_v30 = vadd.f32 %v162_v28, %v160_v26  ;;  %v273_v63 = vpop.permute.xlu2 %272 }
  0x9e   :  { %v710_v31 = vpop.permute.xlu0 %173  ;;  %v179_v32 = vpop.permute.xlu1 %178 }
  0x9f   :  { %v150_v33 = vrot.slane %v149_v29, 4  ;;  %v164_v22 = vadd.f32 %v163_v30, %v161_v19 }
  0xa1   :  { %v151_v35 = vadd.f32 %v150_v33, %v149_v29  ;;  %v165_v36 = vrot.slane %v164_v22, 4 }
  0xa3   :  { %v152_v37 = vrot.slane %v151_v35, 2  ;;  %v166_v38 = vadd.f32 %v165_v36, %v164_v22 }
  0xa5   :  { %v153_v39 = vadd.f32 %v152_v37, %v151_v35  ;;  %v167_v40 = vrot.slane %v166_v38, 2 }
  0xa6   :  { %v191_v41 = vpop.permute.xlu1 %190  ;;  %v721_v14 = vpop.permute.xlu2 %285 }
  0xa7   :  { %v154_v42 = vrot.slane %v153_v39, 1  ;;  %v168_v43 = vadd.f32 %v167_v40, %v166_v38  ;;  %v187_v44 = vpop.permute.xlu0 %186 }
  0xa9   :  { %v155_v46 = vadd.f32 %v154_v42, %v153_v39  ;;  %v169_v47 = vrot.slane %v168_v43, 1 }
  0xab   :  { %v156_v48 = vadd.f32 %v155_v46, %v63_v45  ;;  %v715_v50 = vadd.f32 %v169_v47, %v168_v43 }
  0xad   :  { %v176_v51 = vsub.f32 %v710_v31, %v715_v50  ;;  %v194_v52 = vperm.slane %v156_v48, 0 }
  0xae   :  { %v206_v53 = vpop.permute.xlu1 %205 }
  0xaf   :  { %v196_v54 = vmul.f32 %v194_v52, %v179_v32  ;;  %v199_v55 = vmul.f32 %v194_v52, %v191_v41  ;;  %v198_v56 = vmul.f32 %v194_v52, %v187_v44  ;;  %v197_v57 = vmul.f32 %v194_v52, %v705_v5  ;;  %v214_v58 = vpop.permute.xlu0 %213 }
  0xb1   :  { %v216_v59 = vadd.f32 %v202_v16, %v196_v54  ;;  %v218_v60 = vadd.f32 %v210_v34, %v198_v56  ;;  %v217_v61 = vadd.f32 %v206_v53, %v197_v57  ;;  %v219_v62 = vadd.f32 %v214_v58, %v199_v55 }
  0xb3   :  { %540 = vtanh.f32 %v216_v59 }
  0xb4   :  { %542 = vtanh.f32 %v218_v60 }
  0xb5   :  { %544 = vtanh.f32 %v217_v61 }
  0xb6   :  { %546 = vtanh.f32 %v219_v62  ;;  %v226_v0 = vpop.permute.xlu1 %225 }
  0xb7   :  { %v234_v6 = vpop.permute.xlu0 %233 }
  0xb9   :  { %v541_v2 = vpop.eup %540 }
  0xba   :  { %v543_v1 = vpop.eup %542  ;;  %v244_v3 = vmul.f32 %v541_v2, %v179_v32  ;;  %v240_v4 = vmul.f32 %v541_v2, %v226_v0  ;;  %v301_v32 = vpop.permute.xlu2 %300 }
  0xbb   :  { %v545_v7 = vpop.eup %544  ;;  %v246_v8 = vmul.f32 %v543_v1, %v187_v44  ;;  %v242_v9 = vmul.f32 %v543_v1, %v234_v6 }
  0xbc   :  { %v547_v10 = vpop.eup %546  ;;  %v245_v11 = vmul.f32 %v545_v7, %v705_v5  ;;  %v241_v12 = vmul.f32 %v545_v7, %v230_v49  ;;  %v258_v13 = vmul.f32 %v244_v3, %v240_v4 }
  0xbd   :  { %v260_v15 = vmul.f32 %v246_v8, %v242_v9  ;;  %v247_v16 = vmul.f32 %v547_v10, %v191_v41 }
  0xbe   :  { %v248_v17 = vadd.f32 %v241_v12, %v240_v4  ;;  %v259_v18 = vmul.f32 %v245_v11, %v241_v12  ;;  %v238_v20 = vpop.permute.xlu1 %237 }
  0xbf   :  { %v243_v21 = vmul.f32 %v547_v10, %v238_v20 }
  0xc0   :  { %v262_v23 = vadd.f32 %v259_v18, %v258_v13  ;;  %v249_v19 = vadd.f32 %v248_v17, %v242_v9  ;;  %v278_v29 = vpop.permute.xlu0 %277 }
  0xc1   :  { %v261_v24 = vmul.f32 %v247_v16, %v243_v21 }
  0xc2   :  { %v263_v25 = vadd.f32 %v262_v23, %v260_v15  ;;  %v250_v26 = vadd.f32 %v249_v19, %v243_v21  ;;  %v313_v45 = vpop.permute.xlu2 %312 }
  0xc4   :  { %v251_v27 = vrot.slane %v250_v26, 4  ;;  %v264_v28 = vadd.f32 %v263_v25, %v261_v24 }
  0xc6   :  { %v252_v30 = vadd.f32 %v251_v27, %v250_v26  ;;  %v265_v5 = vrot.slane %v264_v28, 4 }
  0xc7   :  { %v282_v33 = vpop.permute.xlu1 %281 }
  0xc8   :  { %v253_v22 = vrot.slane %v252_v30, 2  ;;  %v266_v34 = vadd.f32 %v265_v5, %v264_v28  ;;  %v305_v41 = vpop.permute.xlu0 %304 }
  0xca   :  { %v254_v35 = vadd.f32 %v253_v22, %v252_v30  ;;  %v267_v36 = vrot.slane %v266_v34, 2  ;;  %v333_v61 = vpop.permute.xlu2 %332 }
  0xcc   :  { %v255_v37 = vrot.slane %v254_v35, 1  ;;  %v268_v38 = vadd.f32 %v267_v36, %v266_v34 }
  0xce   :  { %v256_v39 = vadd.f32 %v255_v37, %v254_v35  ;;  %v269_v40 = vrot.slane %v268_v38, 1 }
  0xcf   :  { %v290_v42 = vpop.permute.xlu1 %289 }
  0xd0   :  { %v257_v43 = vadd.f32 %v256_v39, %v156_v48  ;;  %v270_v44 = vadd.f32 %v269_v40, %v268_v38  ;;  %v325_v60 = vpop.permute.xlu0 %324 }
  0xd2   :  { %v293_v46 = vperm.slane %v257_v43, 0  ;;  %v275_v47 = vsub.f32 %v273_v63, %v270_v44  ;;  %v381_v8 = vpop.permute.xlu2 %380 }
  0xd4   :  { %v295_v49 = vmul.f32 %v293_v46, %v278_v29  ;;  %v296_v52 = vmul.f32 %v293_v46, %v282_v33  ;;  %v298_v53 = vmul.f32 %v293_v46, %v290_v42  ;;  %v726_v54 = vsel %vm474_vm1, %v176_v51, %v275_v47 }
  0xd5   :  { %v297_v58 = vmul.f32 %v293_v46, %v721_v14 }
  0xd6   :  { %v315_v55 = vadd.f32 %v301_v32, %v295_v49  ;;  %v316_v56 = vadd.f32 %v305_v41, %v296_v52  ;;  %v318_v57 = vadd.f32 %v313_v45, %v298_v53 }
  0xd7   :  { %v309_v59 = vpop.permute.xlu1 %308 }
  0xd8   :  { %548 = vtanh.f32 %v315_v55  ;;  %v317_v48 = vadd.f32 %v309_v59, %v297_v58  ;;  %v337_v4 = vpop.permute.xlu0 %336 }
  0xd9   :  { %550 = vtanh.f32 %v316_v56 }
  0xda   :  { %552 = vtanh.f32 %v318_v57  ;;  %v404_v20 = vpop.permute.xlu2 %403 }
  0xdb   :  { %554 = vtanh.f32 %v317_v48 }
  0xde   :  { %v549_v62 = vpop.eup %548 }
  0xdf   :  { %v551_v63 = vpop.eup %550  ;;  %v329_v0 = vpop.permute.xlu1 %328  ;;  %v339_v31 = vmul.f32 %v549_v62, %v325_v60  ;;  %v343_v15 = vmul.f32 %v549_v62, %v278_v29 }
  0xe0   :  { %v553_v2 = vpop.eup %552  ;;  %v340_v50 = vmul.f32 %v551_v63, %v329_v0  ;;  %v344_v16 = vmul.f32 %v551_v63, %v282_v33 }
  0xe1   :  { %v555_v51 = vpop.eup %554  ;;  %v342_v6 = vmul.f32 %v553_v2, %v337_v4  ;;  %v385_v23 = vpop.permute.xlu0 %384  ;;  %v357_v25 = vmul.f32 %v343_v15, %v339_v31  ;;  %v346_v5 = vmul.f32 %v553_v2, %v290_v42 }
  0xe2   :  { %v341_v1 = vmul.f32 %v555_v51, %v333_v61  ;;  %v347_v3 = vadd.f32 %v340_v50, %v339_v31  ;;  %v345_v18 = vmul.f32 %v555_v51, %v721_v14  ;;  %v358_v21 = vmul.f32 %v344_v16, %v340_v50  ;;  %v408_v36 = vpop.permute.xlu2 %407 }
  0xe3   :  { %v360_v14 = vmul.f32 %v346_v5, %v342_v6 }
  0xe4   :  { %v348_v7 = vadd.f32 %v347_v3, %v341_v1  ;;  %v359_v27 = vmul.f32 %v345_v18, %v341_v1  ;;  %v361_v28 = vadd.f32 %v358_v21, %v357_v25 }
  0xe6   :  { %v349_v9 = vadd.f32 %v348_v7, %v342_v6  ;;  %v362_v22 = vadd.f32 %v361_v28, %v359_v27 }
  0xe8   :  { %v350_v10 = vrot.slane %v349_v9, 4  ;;  %v377_v11 = vpop.permute.xlu1 %376  ;;  %v363_v44 = vadd.f32 %v362_v22, %v360_v14 }
  0xe9   :  { %v412_v37 = vpop.permute.xlu0 %411 }
  0xea   :  { %v351_v12 = vadd.f32 %v350_v10, %v349_v9  ;;  %v364_v42 = vrot.slane %v363_v44, 4  ;;  %v428_v49 = vpop.permute.xlu2 %427 }
  0xec   :  { %v352_v13 = vrot.slane %v351_v12, 2  ;;  %v365_v53 = vadd.f32 %v364_v42, %v363_v44 }
  0xee   :  { %v353_v17 = vadd.f32 %v352_v13, %v351_v12  ;;  %v366_v31 = vrot.slane %v365_v53, 2 }
  0xf0   :  { %v354_v19 = vrot.slane %v353_v17, 1  ;;  %v400_v24 = vpop.permute.xlu1 %399  ;;  %v367_v10 = vadd.f32 %v366_v31, %v365_v53 }
  0xf1   :  { %v432_v52 = vpop.permute.xlu0 %431 }
  0xf2   :  { %v355_v26 = vadd.f32 %v354_v19, %v353_v17 }
  0xf4   :  { %v730_v30 = vadd.f32 %v355_v26, %v257_v43 }
  0xf6   :  { %v392_v32 = vperm.slane %v730_v30, 0 }
  0xf8   :  { %v396_v29 = vmul.f32 %v392_v32, %v385_v23  ;;  %v394_v33 = vmul.f32 %v392_v32, %v377_v11  ;;  %v395_v34 = vmul.f32 %v392_v32, %v381_v8  ;;  %v389_v35 = vpop.permute.xlu1 %388 }
  0xf9   :  { %v397_v38 = vmul.f32 %v392_v32, %v389_v35  ;;  %v471_v32 = vpop.permute.xlu0 %470 }
  0xfa   :  { %v416_v39 = vadd.f32 %v408_v36, %v396_v29  ;;  %v415_v40 = vadd.f32 %v404_v20, %v395_v34  ;;  %v414_v41 = vadd.f32 %v400_v24, %v394_v33 }
  0xfb   :  { %v417_v45 = vadd.f32 %v412_v37, %v397_v38 }
  0xfc   :  { %556 = vtanh.f32 %v416_v39 }
  0xfd   :  { %558 = vtanh.f32 %v415_v40 }
  0xfe   :  { %560 = vtanh.f32 %v414_v41 }
  0xff   :  { %562 = vtanh.f32 %v417_v45 }
 0x100   :  { %v424_v43 = vpop.permute.xlu1 %423 }
 0x102   :  { %v557_v46 = vpop.eup %556 }
 0x103   :  { %v559_v47 = vpop.eup %558  ;;  %v440_v58 = vmul.f32 %v557_v46, %v432_v52  ;;  %v444_v59 = vmul.f32 %v557_v46, %v385_v23  ;;  %v372_v23 = vpop.permute.xlu2 %371 }
 0x104   :  { %v561_v55 = vpop.eup %560  ;;  %v439_v56 = vmul.f32 %v559_v47, %v428_v49  ;;  %v443_v57 = vmul.f32 %v559_v47, %v381_v8 }
 0x105   :  { %v438_v48 = vmul.f32 %v561_v55, %v424_v43  ;;  %v442_v60 = vmul.f32 %v561_v55, %v377_v11  ;;  %v563_v61 = vpop.eup %562  ;;  %v458_v2 = vmul.f32 %v444_v59, %v440_v58  ;;  %v368_v11 = vrot.slane %v367_v10, 1 }
 0x106   :  { %v457_v62 = vmul.f32 %v443_v57, %v439_v56  ;;  %v445_v51 = vmul.f32 %v563_v61, %v389_v35 }
 0x107   :  { %v446_v63 = vadd.f32 %v439_v56, %v438_v48  ;;  %v456_v0 = vmul.f32 %v442_v60, %v438_v48  ;;  %v369_v21 = vadd.f32 %v368_v11, %v367_v10 }
 0x108   :  { %v436_v50 = vpop.permute.xlu1 %435 }
 0x109   :  { %v460_v1 = vadd.f32 %v457_v62, %v456_v0  ;;  %v441_v3 = vmul.f32 %v563_v61, %v436_v50  ;;  %v447_v4 = vadd.f32 %v446_v63, %v440_v58  ;;  %v374_v27 = vsub.f32 %v372_v23, %v369_v21 }
 0x10b   :  { %v448_v6 = vadd.f32 %v447_v4, %v441_v3  ;;  %v459_v7 = vmul.f32 %v445_v51, %v441_v3  ;;  %v461_v9 = vadd.f32 %v460_v1, %v458_v2  ;;  %v477_v29 = vsel %vm476_vm2, %v726_v54, %v374_v27 }
 0x10d   :  { %v449_v8 = vrot.slane %v448_v6, 4  ;;  %v462_v12 = vadd.f32 %v461_v9, %v459_v7 }
 0x10f   :  { %v450_v13 = vadd.f32 %v449_v8, %v448_v6  ;;  %v463_v15 = vrot.slane %v462_v12, 4 }
 0x111   :  { %v451_v16 = vrot.slane %v450_v13, 2  ;;  %v464_v17 = vadd.f32 %v463_v15, %v462_v12 }
 0x113   :  { %v452_v18 = vadd.f32 %v451_v16, %v450_v13  ;;  %v465_v20 = vrot.slane %v464_v17, 2 }
 0x115   :  { %v453_v19 = vrot.slane %v452_v18, 1  ;;  %v466_v24 = vadd.f32 %v465_v20, %v464_v17 }
 0x117   :  { %v454_v25 = vadd.f32 %v453_v19, %v452_v18  ;;  %v467_v26 = vrot.slane %v466_v24, 1 }
 0x119   :  { %v455_v28 = vadd.f32 %v454_v25, %v730_v30  ;;  %v468_v5 = vadd.f32 %v467_v26, %v466_v24 }
 0x11b   :  { %v473_v22 = vsub.f32 %v471_v32, %v468_v5  ;;  %492 = vst [vmem:[%s745_s4] sm:$0x1] %v455_v28 }
 0x11d   :  { %v479_v33 = vsel %vm478_vm3, %v477_v29, %v473_v22 }
 0x11e   :  { %v480_v34 = vand.u32 2147483647, %v479_v33 }
 0x120   :  { %v481_v35 = vadd.f32 1e-06, %v480_v34 }
 0x122   :  { %564 = vlog2.f32 %v481_v35 }
 0x128   :  { %v565_v14 = vpop.eup %564 }
 0x129   :  { %v483_v36 = vmul.f32 0.6931472, %v565_v14 }
 0x12b   :  { %v485_v37 = vsel %vm484_vm4, %v483_v36, 0.0 }
 0x12c   :  { %v486_v38 = vrot.slane %v485_v37, 4 }
 0x12e   :  { %v487_v30 = vadd.f32 %v486_v38, %v485_v37 }
 0x130   :  { %v488_v39 = vrot.slane %v487_v30, 2 }
 0x132   :  { %v489_v40 = vadd.f32 %v488_v39, %v487_v30 }
 0x134   :  { %v490_v41 = vrot.slane %v489_v40, 1 }
 0x136   :  { %v491_v44 = vadd.f32 %v490_v41, %v489_v40 }
 0x138   :  { %493 = vst [vmem:[%s745_s4 + $0x1] sm:$0x1] %v491_v44 }

</bundles_post_ra>
